<compile_context>
chip_gen: v5e
topology: v5e:2x2
jax: 0.10.0
libtpu: 0.0.40
codegen_flags: <defaults>
</compile_context>

<pallas_src>
import jax
import jax.numpy as jnp
from jax.experimental import pallas as pl
from jax.experimental.pallas import tpu as pltpu

_NEG_SENTINEL = -1e30  # finite "minus infinity" baked into padded b3 lanes


def _round_up(n, m):
    return (n + m - 1) // m * m


def mlp_kernel(x_ref, w1_ref, b1_ref, w2_ref, b2_ref, w3_ref, b3_ref, o_ref):
    # fc1 + relu: x arrives f32, cast to bf16 only at the MXU feed; accumulate f32.
    x = x_ref[...].astype(jnp.bfloat16)
    h1 = jnp.dot(x, w1_ref[...], preferred_element_type=jnp.float32)
    h1 = jnp.maximum(h1 + b1_ref[...], 0.0)
    # fc2 + relu
    h2 = jnp.dot(h1.astype(jnp.bfloat16), w2_ref[...],
                 preferred_element_type=jnp.float32)
    h2 = jnp.maximum(h2 + b2_ref[...], 0.0)
    # fc3 (padded lanes of b3 carry -1e30, so the mask is already baked in)
    logits = jnp.dot(h2.astype(jnp.bfloat16), w3_ref[...],
                     preferred_element_type=jnp.float32)
    logits = logits + b3_ref[...]
    # Numerically stable log_softmax over the feature axis.
    m = jnp.max(logits, axis=-1, keepdims=True)
    shifted = logits - m
    lse = jnp.log(jnp.sum(jnp.exp(shifted), axis=-1, keepdims=True))
    o_ref[...] = (shifted - lse).astype(o_ref.dtype)


def prepare_params(params):
    """One-time glue: transpose PyTorch (out, in) weights to (in, out), zero-pad hidden /
    output feature dims to 128 lanes (input dim 784 stays unpadded), cast weights to bf16,
    biases to f32 rows, and bake the logit mask into b3's padded lanes. Call once."""
    def pad2(a, rows, cols, fill=0.0):
        return jnp.pad(a, ((0, rows - a.shape[0]), (0, cols - a.shape[1])),
                       constant_values=fill)

    w1, w2, w3 = params["w1"], params["w2"], params["w3"]
    in_sz, h1 = w1.shape[1], w1.shape[0]
    h2, out_sz = w2.shape[0], w3.shape[0]
    h1_p, h2_p, out_p = (_round_up(d, 128) for d in (h1, h2, out_sz))

    prep = {
        "w1": pad2(w1.T, in_sz, h1_p).astype(jnp.bfloat16),   # (784, 128) - no K padding
        "w2": pad2(w2.T, h1_p, h2_p).astype(jnp.bfloat16),
        "w3": pad2(w3.T, h2_p, out_p).astype(jnp.bfloat16),
        "b1": pad2(params["b1"].reshape(1, -1), 1, h1_p).astype(jnp.float32),
        "b2": pad2(params["b2"].reshape(1, -1), 1, h2_p).astype(jnp.float32),
        # Padded logit lanes get a large finite negative so exp() kills them w/o NaN risk.
        "b3": pad2(params["b3"].reshape(1, -1).astype(jnp.float32), 1, out_p,
                   fill=_NEG_SENTINEL),
    }
    meta = {"in_sz": in_sz, "out_sz": out_sz, "out_pad": out_p}
    return prep, meta


def mlp_forward(x, prep, meta, *, tile_b=2048, out_dtype=jnp.float32, unpad=True):
    """x: (B, 784) float32. prep/meta: from prepare_params().
    Returns (B, 10) log-probabilities (out_dtype). Set unpad=False / out_dtype=bf16 to let a
    fused consumer read the padded (B_pad, 128) output directly and skip the slice pass."""
    B, in_sz = x.shape
    assert in_sz == meta["in_sz"]
    out_pad, out_sz = meta["out_pad"], meta["out_sz"]

    # Batch tile: multiple of 8; large enough to amortize per-step overhead but clamped so
    # (a) the grid has >= 2 steps for large B (v7x megacore sharding of the "parallel" axis)
    # (b) double-buffered f32 x tiles stay well under the scoped-VMEM default on v5e/v7x.
    tile_b = max(8, min(tile_b, _round_up(pl.cdiv(B, 2), 8), _round_up(B, 8)))
    B_pad = _round_up(B, tile_b)
    xp = x if B_pad == B else jnp.pad(x, ((0, B_pad - B), (0, 0)))  # batch-only pad, no cast

    def resident(arr):  # weights/biases: same block every grid step -> stay in VMEM
        return pl.BlockSpec(arr.shape, lambda i: (0, 0))

    out_itemsize = jnp.dtype(out_dtype).itemsize
    w_bytes = sum(int(a.size) * a.dtype.itemsize for a in prep.values())
    x_tile_bytes = tile_b * in_sz * x.dtype.itemsize
    out_tile_bytes = tile_b * out_pad * out_itemsize
    vmem_limit = min(2 * (x_tile_bytes + out_tile_bytes) + 2 * w_bytes + (4 << 20),
                     64 << 20)

    cost = pl.CostEstimate(
        flops=2 * B_pad * (prep["w1"].shape[0] * prep["w1"].shape[1]
                           + prep["w2"].shape[0] * prep["w2"].shape[1]
                           + prep["w3"].shape[0] * prep["w3"].shape[1]),
        transcendentals=B_pad * (out_pad + 1),
        bytes_accessed=int(xp.size) * xp.dtype.itemsize + w_bytes
                       + B_pad * out_pad * out_itemsize,
    )

    out = pl.pallas_call(
        mlp_kernel,
        out_shape=jax.ShapeDtypeStruct((B_pad, out_pad), out_dtype),
        grid=(B_pad // tile_b,),
        in_specs=[
            pl.BlockSpec((tile_b, in_sz), lambda i: (i, 0)),   # f32 x tile stream (no pad)
            resident(prep["w1"]), resident(prep["b1"]),
            resident(prep["w2"]), resident(prep["b2"]),
            resident(prep["w3"]), resident(prep["b3"]),
        ],
        out_specs=pl.BlockSpec((tile_b, out_pad), lambda i: (i, 0)),  # lane-dense 128 wide
        compiler_params=pltpu.CompilerParams(
            dimension_semantics=("parallel",),
            vmem_limit_bytes=int(vmem_limit)),
        cost_estimate=cost,
    )(xp, prep["w1"], prep["b1"], prep["w2"], prep["b2"], prep["w3"], prep["b3"])

    if unpad:
        return out[:B, :out_sz]
    return out  # padded (B_pad, 128); padded lanes hold ~-1e30, rows >= B are junk


def init_params(key, in_sz=784, layers=(120, 84), out_sz=10):
    """Deterministic init matching nn.Linear shapes (weight: (out, in), bias: (out,))."""
    dims = [(layers[0], in_sz), (layers[1], layers[0]), (out_sz, layers[1])]
    params = {}
    keys = jax.random.split(key, 6)
    for i, (fan_out, fan_in) in enumerate(dims, start=1):
        bound = 1.0 / (fan_in ** 0.5)  # PyTorch default uniform(-1/sqrt(fan_in), +)
        params[f"w{i}"] = jax.random.uniform(
            keys[2 * (i - 1)], (fan_out, fan_in), jnp.float32, -bound, bound)
        params[f"b{i}"] = jax.random.uniform(
            keys[2 * (i - 1) + 1], (fan_out,), jnp.float32, -bound, bound)
    return params


def reference_forward_f32(x, params):
    """Pure f32 reference with the original PyTorch semantics."""
    h1 = jnp.maximum(x @ params["w1"].T + params["b1"], 0.0)
    h2 = jnp.maximum(h1 @ params["w2"].T + params["b2"], 0.0)
    logits = h2 @ params["w3"].T + params["b3"]
    return jax.nn.log_softmax(logits, axis=1)


def reference_forward_bf16(x, params):
    """Reference reproducing the kernel's numerics (bf16 matmul inputs, f32 accum)."""
    c = lambda a: a.astype(jnp.bfloat16)
    h1 = jnp.dot(c(x), c(params["w1"].T), preferred_element_type=jnp.float32)
    h1 = jnp.maximum(h1 + params["b1"], 0.0)
    h2 = jnp.dot(c(h1), c(params["w2"].T), preferred_element_type=jnp.float32)
    h2 = jnp.maximum(h2 + params["b2"], 0.0)
    logits = jnp.dot(c(h2), c(params["w3"].T), preferred_element_type=jnp.float32)
    logits = logits + params["b3"]
    return jax.nn.log_softmax(logits, axis=1)


if __name__ == "__main__":
    key = jax.random.PRNGKey(0)
    pkey, xkey = jax.random.split(key)
    params = init_params(pkey)
    prep, meta = prepare_params(params)

    # MNIST-flattened-like input at a small batch.
    x = jax.random.normal(xkey, (8, 784), jnp.float32)

    out = mlp_forward(x, prep, meta)
    out = jax.block_until_ready(out)
    assert out.shape == (8, 10)

    # Tight check against a reference with matching bf16 numerics.
    ref_bf16 = reference_forward_bf16(x, params)
    assert jnp.allclose(out, ref_bf16, atol=2e-3, rtol=2e-3)

    # Loose sanity check against the pure-f32 PyTorch-semantics reference.
    ref_f32 = reference_forward_f32(x, params)
    assert jnp.allclose(out, ref_f32, atol=0.25, rtol=0.25)

    print("KERNEL_OK")
</pallas_src>

<mosaic_0001>
module attributes {stable_mosaic.version = 11 : i64} {
  func.func @mlp_kernel(%arg0: i32, %arg1: memref<8x784xf32, #tpu.memory_space<vmem>>, %arg2: memref<784x128xbf16, #tpu.memory_space<vmem>>, %arg3: memref<1x128xf32, #tpu.memory_space<vmem>>, %arg4: memref<128x128xbf16, #tpu.memory_space<vmem>>, %arg5: memref<1x128xf32, #tpu.memory_space<vmem>>, %arg6: memref<128x128xbf16, #tpu.memory_space<vmem>>, %arg7: memref<1x128xf32, #tpu.memory_space<vmem>>, %arg8: memref<8x128xf32, #tpu.memory_space<vmem>>) attributes {dimension_semantics = [#tpu.dimension_semantics<parallel>], iteration_bounds = array<i64: 1>, scalar_prefetch = 0 : i64, scratch_operands = 0 : i64, tpu.core_type = #tpu.core_type<tc>, window_params = [{transform_indices = @transform_0, window_bounds = array<i64: 8, 784>}, {pipeline_mode = #tpu.pipeline_mode<synchronous>, transform_indices = @transform_1, window_bounds = array<i64: 784, 128>}, {pipeline_mode = #tpu.pipeline_mode<synchronous>, transform_indices = @transform_2, window_bounds = array<i64: 1, 128>}, {pipeline_mode = #tpu.pipeline_mode<synchronous>, transform_indices = @transform_3, window_bounds = array<i64: 128, 128>}, {pipeline_mode = #tpu.pipeline_mode<synchronous>, transform_indices = @transform_4, window_bounds = array<i64: 1, 128>}, {pipeline_mode = #tpu.pipeline_mode<synchronous>, transform_indices = @transform_5, window_bounds = array<i64: 128, 128>}, {pipeline_mode = #tpu.pipeline_mode<synchronous>, transform_indices = @transform_6, window_bounds = array<i64: 1, 128>}, {transform_indices = @transform_7, window_bounds = array<i64: 8, 128>}]} {
    %c0 = arith.constant 0 : index
    %c0_0 = arith.constant 0 : index
    %0 = vector.load %arg1[%c0, %c0_0] : memref<8x784xf32, #tpu.memory_space<vmem>>, vector<8x784xf32>
    %1 = arith.truncf %0 : vector<8x784xf32> to vector<8x784xbf16>
    %c0_1 = arith.constant 0 : index
    %c0_2 = arith.constant 0 : index
    %2 = vector.load %arg2[%c0_1, %c0_2] : memref<784x128xbf16, #tpu.memory_space<vmem>>, vector<784x128xbf16>
    %cst = arith.constant dense<0.000000e+00> : vector<8x128xf32>
    %3 = tpu.matmul %1, %2, %cst {dimension_numbers = #tpu.dot_dimension_numbers<[1], [0], [0], [1], [0, 0, 1, 1], [], []>} : vector<8x784xbf16>, vector<784x128xbf16>, vector<8x128xf32> -> vector<8x128xf32>
    %c0_3 = arith.constant 0 : index
    %c0_4 = arith.constant 0 : index
    %4 = vector.load %arg3[%c0_3, %c0_4] : memref<1x128xf32, #tpu.memory_space<vmem>>, vector<1x128xf32>
    %5 = vector.broadcast %4 : vector<1x128xf32> to vector<8x128xf32>
    %6 = arith.addf %3, %5 : vector<8x128xf32>
    %cst_5 = arith.constant 0.000000e+00 : f32
    %7 = vector.broadcast %cst_5 : f32 to vector<8x128xf32>
    %8 = arith.maximumf %6, %7 : vector<8x128xf32>
    %9 = arith.truncf %8 : vector<8x128xf32> to vector<8x128xbf16>
    %c0_6 = arith.constant 0 : index
    %c0_7 = arith.constant 0 : index
    %10 = vector.load %arg4[%c0_6, %c0_7] : memref<128x128xbf16, #tpu.memory_space<vmem>>, vector<128x128xbf16>
    %cst_8 = arith.constant dense<0.000000e+00> : vector<8x128xf32>
    %11 = tpu.matmul %9, %10, %cst_8 {dimension_numbers = #tpu.dot_dimension_numbers<[1], [0], [0], [1], [0, 0, 1, 1], [], []>} : vector<8x128xbf16>, vector<128x128xbf16>, vector<8x128xf32> -> vector<8x128xf32>
    %c0_9 = arith.constant 0 : index
    %c0_10 = arith.constant 0 : index
    %12 = vector.load %arg5[%c0_9, %c0_10] : memref<1x128xf32, #tpu.memory_space<vmem>>, vector<1x128xf32>
    %13 = vector.broadcast %12 : vector<1x128xf32> to vector<8x128xf32>
    %14 = arith.addf %11, %13 : vector<8x128xf32>
    %cst_11 = arith.constant 0.000000e+00 : f32
    %15 = vector.broadcast %cst_11 : f32 to vector<8x128xf32>
    %16 = arith.maximumf %14, %15 : vector<8x128xf32>
    %17 = arith.truncf %16 : vector<8x128xf32> to vector<8x128xbf16>
    %c0_12 = arith.constant 0 : index
    %c0_13 = arith.constant 0 : index
    %18 = vector.load %arg6[%c0_12, %c0_13] : memref<128x128xbf16, #tpu.memory_space<vmem>>, vector<128x128xbf16>
    %cst_14 = arith.constant dense<0.000000e+00> : vector<8x128xf32>
    %19 = tpu.matmul %17, %18, %cst_14 {dimension_numbers = #tpu.dot_dimension_numbers<[1], [0], [0], [1], [0, 0, 1, 1], [], []>} : vector<8x128xbf16>, vector<128x128xbf16>, vector<8x128xf32> -> vector<8x128xf32>
    %c0_15 = arith.constant 0 : index
    %c0_16 = arith.constant 0 : index
    %20 = vector.load %arg7[%c0_15, %c0_16] : memref<1x128xf32, #tpu.memory_space<vmem>>, vector<1x128xf32>
    %21 = vector.broadcast %20 : vector<1x128xf32> to vector<8x128xf32>
    %22 = arith.addf %19, %21 : vector<8x128xf32>
    %cst_17 = arith.constant dense<0xFF800000> : vector<8xf32>
    %23 = vector.multi_reduction <maximumf>, %22, %cst_17 [1] : vector<8x128xf32> to vector<8xf32>
    %24 = vector.shape_cast %23 : vector<8xf32> to vector<8x1xf32>
    %25 = vector.broadcast %24 : vector<8x1xf32> to vector<8x128xf32>
    %26 = arith.subf %22, %25 : vector<8x128xf32>
    %27 = math.exp %26 : vector<8x128xf32>
    %cst_18 = arith.constant dense<0.000000e+00> : vector<8xf32>
    %28 = vector.multi_reduction <add>, %27, %cst_18 [1] : vector<8x128xf32> to vector<8xf32>
    %29 = vector.shape_cast %28 : vector<8xf32> to vector<8x1xf32>
    %30 = math.log %29 : vector<8x1xf32>
    %31 = vector.broadcast %30 : vector<8x1xf32> to vector<8x128xf32>
    %32 = arith.subf %26, %31 : vector<8x128xf32>
    %c0_19 = arith.constant 0 : index
    %c0_20 = arith.constant 0 : index
    %33 = vector.load %arg8[%c0_19, %c0_20] : memref<8x128xf32, #tpu.memory_space<vmem>>, vector<8x128xf32>
    tpu.vector_store %arg8[%c0_19, %c0_20], %32 {strides = array<i32>} : memref<8x128xf32, #tpu.memory_space<vmem>>, vector<8x128xf32>,
    return
  }
  func.func @transform_0(%arg0: i32) -> (i32, i32) {
    %c0_i32 = arith.constant 0 : i32
    %c0_i32_0 = arith.constant 0 : i32
    return %arg0, %c0_i32 : i32, i32
  }
  func.func @transform_1(%arg0: i32) -> (i32, i32) {
    %c0_i32 = arith.constant 0 : i32
    %c0_i32_0 = arith.constant 0 : i32
    %c0_i32_1 = arith.constant 0 : i32
    return %c0_i32, %c0_i32_0 : i32, i32
  }
  func.func @transform_2(%arg0: i32) -> (i32, i32) {
    %c0_i32 = arith.constant 0 : i32
    %c0_i32_0 = arith.constant 0 : i32
    %c0_i32_1 = arith.constant 0 : i32
    return %c0_i32, %c0_i32_0 : i32, i32
  }
  func.func @transform_3(%arg0: i32) -> (i32, i32) {
    %c0_i32 = arith.constant 0 : i32
    %c0_i32_0 = arith.constant 0 : i32
    %c0_i32_1 = arith.constant 0 : i32
    return %c0_i32, %c0_i32_0 : i32, i32
  }
  func.func @transform_4(%arg0: i32) -> (i32, i32) {
    %c0_i32 = arith.constant 0 : i32
    %c0_i32_0 = arith.constant 0 : i32
    %c0_i32_1 = arith.constant 0 : i32
    return %c0_i32, %c0_i32_0 : i32, i32
  }
  func.func @transform_5(%arg0: i32) -> (i32, i32) {
    %c0_i32 = arith.constant 0 : i32
    %c0_i32_0 = arith.constant 0 : i32
    %c0_i32_1 = arith.constant 0 : i32
    return %c0_i32, %c0_i32_0 : i32, i32
  }
  func.func @transform_6(%arg0: i32) -> (i32, i32) {
    %c0_i32 = arith.constant 0 : i32
    %c0_i32_0 = arith.constant 0 : i32
    %c0_i32_1 = arith.constant 0 : i32
    return %c0_i32, %c0_i32_0 : i32, i32
  }
  func.func @transform_7(%arg0: i32) -> (i32, i32) {
    %c0_i32 = arith.constant 0 : i32
    %c0_i32_0 = arith.constant 0 : i32
    return %arg0, %c0_i32 : i32, i32
  }
}

</mosaic_0001>

<bundles_post_ra>
// kernel: tpu_custom_call.1
= control target key start
LH: loop header
LB: loop body
LE: loop exit
PB: predicated region body
PF: predicated region fallthrough
CT: control target
= control target key end

     0   :  { %12 = vsyncpa [#allocation3], 0  ;;  %s1329_s0 = inlined_call_operand.hbm [shape: f32[8,784], index: 0, kind: input, shape index: {}]   ;;  %s1330_s1 = inlined_call_operand.hbm [shape: bf16[784,128], index: 1, kind: input, shape index: {}]   ;;  %s1331_s2 = inlined_call_operand.vmem [shape: f32[1,128], index: 2, kind: input, shape index: {}]   ;;  %s1332_s3 = inlined_call_operand.hbm [shape: bf16[128,128], index: 3, kind: input, shape index: {}]   ;;  %s1333_s4 = inlined_call_operand.vmem [shape: f32[1,128], index: 4, kind: input, shape index: {}]   ;;  %s1334_s5 = inlined_call_operand.hbm [shape: bf16[128,128], index: 5, kind: input, shape index: {}]   ;;  %s1335_s6 = inlined_call_operand.vmem [shape: f32[1,128], index: 6, kind: input, shape index: {}]   ;;  %s1336_s7 = inlined_call_operand.hbm [shape: f32[8,128], index: 7, kind: output, shape index: {}]  }
   0x1   :  { %13 = vsyncpa [#allocation6], 0 }
   0x2   :  { %14 = vsyncpa [#allocation9], 0  ;;  %s31_s26 = sshll.u32 %s1330_s1, 4  ;;  %s32_s26 = int_to_ptr.hbm [resolvable:$true] %s31_s26 }
   0x3   :  { %15 = vsyncpa [#allocation4], 0  ;;  %s1258_s27 = smov [#allocation5]   ;;  %s21_s8 = sshll.u32 %s1329_s0, 4  ;;  %s22_s8 = int_to_ptr.hbm [resolvable:$true] %s21_s8 }
   0x4   :  { %s33_s28 = sshll.u32 %s1258_s27, 4  ;;  %s1259_s9 = smov 64   ;;  %s34_s28 = int_to_ptr.vmem [resolvable:$true] %s33_s28 }
   0x5   :  { %s1260_s10 = smov 4   ;;  %s1261_s11 = smov [#allocation2]  }
   0x6   :  { %39 = dma.hbm_to_vmem [thread:$0]  %s32_s26, 6272, %s34_s28, [#allocation6], %s1259_s9, %s1259_s9, %s1260_s10  }
   0x7   :  { %s23_s12 = sshll.u32 %s1261_s11, 4  ;;  %s46_s15 = sshll.u32 %s1332_s3, 4  ;;  %s24_s12 = int_to_ptr.vmem [resolvable:$true] %s23_s12  ;;  %s47_s15 = int_to_ptr.hbm [resolvable:$true] %s46_s15 }
   0x8   :  { %26 = dma.hbm_to_vmem [thread:$0]  %s22_s8, 896, %s24_s12, [#allocation3]  }
   0x9   :  { %s61_s17 = sshll.u32 %s1334_s5, 4  ;;  %s1262_s18 = smov [#allocation7]   ;;  %s62_s17 = int_to_ptr.hbm [resolvable:$true] %s61_s17 }
   0xa   :  { %s48_s19 = sshll.u32 %s1262_s18, 4  ;;  %s1263_s0 = smov [#allocation8]   ;;  %s49_s19 = int_to_ptr.vmem [resolvable:$true] %s48_s19 }
   0xb   :  { %54 = dma.hbm_to_vmem [thread:$0]  %s47_s15, 1024, %s49_s19, [#allocation6], %s1259_s9, %s1259_s9, %s1260_s10  }
   0xc   :  { %s63_s20 = sshll.u32 %s1263_s0, 4  ;;  %s64_s20 = int_to_ptr.vmem [resolvable:$true] %s63_s20 }
   0xd   :  { %69 = dma.hbm_to_vmem [thread:$0]  %s62_s17, 1024, %s64_s20, [#allocation9], %s1259_s9, %s1259_s9, %s1260_s10  }
   0xe   :  { %1250 = dma.done.wait [#allocation3], 896  }
   0xf   :  { %1251 = vsyncadd [#allocation3], 4294966400 }
  0x10   :  { %1252 = dma.done.wait [#allocation6], 7296  }
  0x11   :  { %1253 = vsyncadd [#allocation6], 4294960000 }
  0x12   :  { %1254 = dma.done.wait [#allocation9], 1024  }
  0x13   :  { %1255 = vsyncadd [#allocation9], 4294966272  ;;  %v1058_v0 = vld [vmem:[#allocation5 + $0x38] sm:$0xff]  ;;  %v1057_v3 = vld [vmem:[#allocation5 + $0x30] sm:$0xff]  ;;  %vm499_vm0 = vcmask 130048   ;;  %s778_s27 = sshll.u32 %s1336_s7, 4  ;;  %s779_s27 = int_to_ptr.hbm [resolvable:$true] %s778_s27 }
  0x14   :  { %v1066_v1 = vld [vmem:[#allocation5 + $0x78] sm:$0xff]  ;;  %503 = vmatpush.bf16.msra.mxu0 %v1058_v0  ;;  %v1065_v4 = vld [vmem:[#allocation5 + $0x70] sm:$0xff]  ;;  %v1056_v8 = vld [vmem:[#allocation5 + $0x28] sm:$0xff] }
  0x15   :  { %v1074_v2 = vld [vmem:[#allocation5 + $0xb8] sm:$0xff]  ;;  %516 = vmatpush.bf16.msra.mxu1 %v1066_v1  ;;  %v1073_v5 = vld [vmem:[#allocation5 + $0xb0] sm:$0xff]  ;;  %v1064_v9 = vld [vmem:[#allocation5 + $0x68] sm:$0xff] }
  0x16   :  { %529 = vmatpush.bf16.msra.mxu2 %v1074_v2  ;;  %v1082_v6 = vld [vmem:[#allocation5 + $0xf8] sm:$0xff]  ;;  %v1081_v7 = vld [vmem:[#allocation5 + $0xf0] sm:$0xff]  ;;  %v1072_v10 = vld [vmem:[#allocation5 + $0xa8] sm:$0xff] }
  0x17   :  { %542 = vmatpush.bf16.msra.mxu3 %v1082_v6  ;;  %v1080_v11 = vld [vmem:[#allocation5 + $0xe8] sm:$0xff]  ;;  %v1055_v12 = vld [vmem:[#allocation5 + $0x20] sm:$0xff]  ;;  %v1054_v16 = vld [vmem:[#allocation5 + $0x18] sm:$0xff] }
  0x18   :  { %504 = vmatpush.bf16.msra.mxu0 %v1057_v3  ;;  %v1063_v13 = vld [vmem:[#allocation5 + $0x60] sm:$0xff]  ;;  %v1062_v17 = vld [vmem:[#allocation5 + $0x58] sm:$0xff]  ;;  %v1053_v20 = vld [vmem:[#allocation5 + $0x10] sm:$0xff] }
  0x19   :  { %517 = vmatpush.bf16.msra.mxu1 %v1065_v4  ;;  %v1071_v14 = vld [vmem:[#allocation5 + $0xa0] sm:$0xff]  ;;  %v1070_v18 = vld [vmem:[#allocation5 + $0x98] sm:$0xff]  ;;  %v1061_v21 = vld [vmem:[#allocation5 + $0x50] sm:$0xff] }
  0x1a   :  { %530 = vmatpush.bf16.msra.mxu2 %v1073_v5  ;;  %v1079_v15 = vld [vmem:[#allocation5 + $0xe0] sm:$0xff]  ;;  %v1078_v19 = vld [vmem:[#allocation5 + $0xd8] sm:$0xff]  ;;  %v1069_v22 = vld [vmem:[#allocation5 + $0x90] sm:$0xff] }
  0x1b   :  { %543 = vmatpush.bf16.msra.mxu3 %v1081_v7  ;;  %v1077_v23 = vld [vmem:[#allocation5 + $0xd0] sm:$0xff]  ;;  %v1052_v24 = vld [vmem:[#allocation5 + $0x8] sm:$0xff]  ;;  %v1051_v27 = vld [vmem:[#allocation5] sm:$0xff] }
  0x1c   :  { %505 = vmatpush.bf16.msra.mxu0 %v1056_v8  ;;  %v1060_v25 = vld [vmem:[#allocation5 + $0x48] sm:$0xff]  ;;  %v1059_v29 = vld [vmem:[#allocation5 + $0x40] sm:$0xff]  ;;  %v90_v31 = vld [vmem:[#allocation2 + $0x8] sm:$0xff] }
  0x1d   :  { %518 = vmatpush.bf16.msra.mxu1 %v1064_v9  ;;  %v1068_v26 = vld [vmem:[#allocation5 + $0x88] sm:$0xff]  ;;  %v1090_v32 = vld [vmem:[#allocation5 + $0x138] sm:$0xff]  ;;  %v1067_v34 = vld [vmem:[#allocation5 + $0x80] sm:$0xff]  ;;  %v97_v37 = vpack.c.bf16 %v90_v31, %v90_v31 }
  0x1e   :  { %531 = vmatpush.bf16.msra.mxu2 %v1072_v10  ;;  %v1076_v28 = vld [vmem:[#allocation5 + $0xc8] sm:$0xff]  ;;  %v1098_v33 = vld [vmem:[#allocation5 + $0x178] sm:$0xff]  ;;  %v1075_v38 = vld [vmem:[#allocation5 + $0xc0] sm:$0xff] }
  0x1f   :  { %544 = vmatpush.bf16.msra.mxu3 %v1080_v11  ;;  %v89_v30 = vld [vmem:[#allocation2] sm:$0xff]  ;;  %v91_v35 = vld [vmem:[#allocation2 + $0x10] sm:$0xff]  ;;  %v1099_v39 = vld [vmem:[#allocation5 + $0x180] sm:$0xff] }
  0x20   :  { %506 = vmatpush.bf16.msra.mxu0 %v1055_v12  ;;  %v96_v36 = vpack.c.bf16 %v89_v30, %v89_v30  ;;  %v92_v40 = vld [vmem:[#allocation2 + $0x18] sm:$0xff]  ;;  %v1089_v41 = vld [vmem:[#allocation5 + $0x130] sm:$0xff]  ;;  %v98_v43 = vpack.c.bf16 %v91_v35, %v91_v35  ;;  %v1088_v45 = vld [vmem:[#allocation5 + $0x128] sm:$0xff] }
  0x21   :  { %519 = vmatpush.bf16.msra.mxu1 %v1063_v13  ;;  %v1097_v42 = vld [vmem:[#allocation5 + $0x170] sm:$0xff]  ;;  %v99_v44 = vpack.c.bf16 %v92_v40, %v92_v40  ;;  %v1096_v46 = vld [vmem:[#allocation5 + $0x168] sm:$0xff]  ;;  %v1087_v47 = vld [vmem:[#allocation5 + $0x120] sm:$0xff] }
  0x22   :  { %532 = vmatpush.bf16.msra.mxu2 %v1071_v14  ;;  %v1095_v48 = vld [vmem:[#allocation5 + $0x160] sm:$0xff]  ;;  %v1086_v49 = vld [vmem:[#allocation5 + $0x118] sm:$0xff]  ;;  %v1085_v52 = vld [vmem:[#allocation5 + $0x110] sm:$0xff] }
  0x23   :  { %545 = vmatpush.bf16.msra.mxu3 %v1079_v15  ;;  %v1094_v50 = vld [vmem:[#allocation5 + $0x158] sm:$0xff]  ;;  %v1093_v53 = vld [vmem:[#allocation5 + $0x150] sm:$0xff]  ;;  %v1084_v55 = vld [vmem:[#allocation5 + $0x108] sm:$0xff] }
  0x24   :  { %507 = vmatpush.bf16.msra.mxu0 %v1054_v16  ;;  %v95_v51 = vld [vmem:[#allocation2 + $0x30] sm:$0xff]  ;;  %v1092_v56 = vld [vmem:[#allocation5 + $0x148] sm:$0xff]  ;;  %v1083_v57 = vld [vmem:[#allocation5 + $0x100] sm:$0xff] }
  0x25   :  { %520 = vmatpush.bf16.msra.mxu1 %v1062_v17  ;;  %v102_v54 = vpack.c.bf16 %v95_v51, %v95_v51  ;;  %v1091_v58 = vld [vmem:[#allocation5 + $0x140] sm:$0xff]  ;;  %v93_v59 = vld [vmem:[#allocation2 + $0x20] sm:$0xff]  ;;  %v94_v60 = vld [vmem:[#allocation2 + $0x28] sm:$0xff] }
  0x26   :  { %533 = vmatpush.bf16.msra.mxu2 %v1070_v18  ;;  %v100_v61 = vpack.c.bf16 %v93_v59, %v93_v59  ;;  %v101_v62 = vpack.c.bf16 %v94_v60, %v94_v60  ;;  %v1107_v63 = vld [vmem:[#allocation7 + $0x38] sm:$0xff]  ;;  %v1106_v0 = vld [vmem:[#allocation7 + $0x30] sm:$0xff]  ;;  %v1105_v1 = vld [vmem:[#allocation7 + $0x28] sm:$0xff] }
  0x27   :  { %546 = vmatpush.bf16.msra.mxu3 %v1078_v19  ;;  %v1104_v2 = vld [vmem:[#allocation7 + $0x20] sm:$0xff]  ;;  %v1103_v3 = vld [vmem:[#allocation7 + $0x18] sm:$0xff]  ;;  %v1102_v4 = vld [vmem:[#allocation7 + $0x10] sm:$0xff] }
  0x28   :  { %508 = vmatpush.bf16.msra.mxu0 %v1053_v20  ;;  %v1101_v5 = vld [vmem:[#allocation7 + $0x8] sm:$0xff]  ;;  %v1100_v8 = vld [vmem:[#allocation7] sm:$0xff]  ;;  %v1115_v11 = vld [vmem:[#allocation8 + $0x38] sm:$0xff] }
  0x29   :  { %521 = vmatpush.bf16.msra.mxu1 %v1061_v21  ;;  %v1114_v14 = vld [vmem:[#allocation8 + $0x30] sm:$0xff]  ;;  %v1123_v15 = vld [vmem:[%s1331_s2] ss:$0 sm:$0xff]  ;;  %v1113_v16 = vld [vmem:[#allocation8 + $0x28] sm:$0xff] }
  0x2a   :  { %534 = vmatpush.bf16.msra.mxu2 %v1069_v22  ;;  %v1112_v20 = vld [vmem:[#allocation8 + $0x20] sm:$0xff]  ;;  %v1111_v22 = vld [vmem:[#allocation8 + $0x18] sm:$0xff] }
  0x2b   :  { %547 = vmatpush.bf16.msra.mxu3 %v1077_v23 }
  0x2c   :  { %509 = vmatpush.bf16.msra.mxu0 %v1052_v24 }
  0x2d   :  { %522 = vmatpush.bf16.msra.mxu1 %v1060_v25  ;;  %v1110_v25 = vld [vmem:[#allocation8 + $0x10] sm:$0xff] }
  0x2e   :  { %535 = vmatpush.bf16.msra.mxu2 %v1068_v26 }
  0x2f   :  { %548 = vmatpush.bf16.msra.mxu3 %v1076_v28 }
  0x30   :  { %510 = vmatpush.bf16.msra.mxu0 %v1051_v27 }
  0x31   :  { %523 = vmatpush.bf16.msra.mxu1 %v1059_v29 }
  0x32   :  { %536 = vmatpush.bf16.msra.mxu2 %v1067_v34 }
  0x33   :  { %511 = vmatmul.bf16.vlgmr.msra.gmra.mxu0 %v96_v36  ;;  %549 = vmatpush.bf16.msra.mxu3 %v1075_v38  ;;  %v1108_v38 = vld [vmem:[#allocation8] sm:$0xff] }
  0x34   :  { %555 = vmatpush.bf16.msrb.mxu0 %v1090_v32  ;;  %524 = vmatmul.bf16.vlgmr.msra.gmra.mxu1 %v97_v37  ;;  %v1109_v37 = vld [vmem:[#allocation8 + $0x8] sm:$0xff] }
  0x35   :  { %568 = vmatpush.bf16.msrb.mxu1 %v1098_v33  ;;  %537 = vmatmul.bf16.vlgmr.msra.gmra.mxu2 %v98_v43 }
  0x36   :  { %588 = vmatpush.bf16.msrb.mxu2 %v1099_v39  ;;  %550 = vmatmul.bf16.vlgmr.msra.gmra.mxu3 %v99_v44  ;;  %v1124_v39 = vld [vmem:[%s1333_s4] ss:$0 sm:$0xff]  ;;  %s1264_s4 = smov [#allocation10]  }
  0x37   :  { %664 = vmatpush.bf16.msrb.mxu3 %v1107_v63  ;;  %s776_s24 = sshll.u32 %s1264_s4, 4  ;;  %s777_s24 = int_to_ptr.vmem [resolvable:$true] %s776_s24 }
  0x38   :  { %556 = vmatpush.bf16.msrb.mxu0 %v1089_v41 }
  0x39   :  { %569 = vmatpush.bf16.msrb.mxu1 %v1097_v42 }
  0x3a   :  { %747 = vmatpush.bf16.msra.mxu2 %v1115_v11 }
  0x3b   :  { %665 = vmatpush.bf16.msrb.mxu3 %v1106_v0 }
  0x3c   :  { %557 = vmatpush.bf16.msrb.mxu0 %v1088_v45  ;;  %v1125_v45 = vld [vmem:[%s1335_s6] ss:$0 sm:$0xff] }
  0x3d   :  { %570 = vmatpush.bf16.msrb.mxu1 %v1096_v46 }
  0x3e   :  { %748 = vmatpush.bf16.msra.mxu2 %v1114_v14 }
  0x3f   :  { %666 = vmatpush.bf16.msrb.mxu3 %v1105_v1 }
  0x40   :  { %558 = vmatpush.bf16.msrb.mxu0 %v1087_v47 }
  0x41   :  { %571 = vmatpush.bf16.msrb.mxu1 %v1095_v48 }
  0x42   :  { %749 = vmatpush.bf16.msra.mxu2 %v1113_v16 }
  0x43   :  { %667 = vmatpush.bf16.msrb.mxu3 %v1104_v2 }
  0x44   :  { %559 = vmatpush.bf16.msrb.mxu0 %v1086_v49 }
  0x45   :  { %572 = vmatpush.bf16.msrb.mxu1 %v1094_v50  ;;  %986 = vmatmul.msk.bf16.vlgmr.msrb.gmra.mxu2 %vm499_vm0, %v102_v54 }
  0x46   :  { %750 = vmatpush.bf16.msra.mxu2 %v1112_v20 }
  0x47   :  { %668 = vmatpush.bf16.msrb.mxu3 %v1103_v3 }
  0x48   :  { %560 = vmatpush.bf16.msrb.mxu0 %v1085_v52 }
  0x49   :  { %573 = vmatpush.bf16.msrb.mxu1 %v1093_v53 }
  0x4a   :  { %751 = vmatpush.bf16.msra.mxu2 %v1111_v22 }
  0x4b   :  { %669 = vmatpush.bf16.msrb.mxu3 %v1102_v4 }
  0x4c   :  { %561 = vmatpush.bf16.msrb.mxu0 %v1084_v55 }
  0x4d   :  { %574 = vmatpush.bf16.msrb.mxu1 %v1092_v56 }
  0x4e   :  { %752 = vmatpush.bf16.msra.mxu2 %v1110_v25 }
  0x4f   :  { %670 = vmatpush.bf16.msrb.mxu3 %v1101_v5 }
  0x50   :  { %562 = vmatpush.bf16.msrb.mxu0 %v1083_v57 }
  0x51   :  { %575 = vmatpush.bf16.msrb.mxu1 %v1091_v58 }
  0x52   :  { %753 = vmatpush.bf16.msra.mxu2 %v1109_v37 }
  0x53   :  { %563 = vmatmul.bf16.vlgmr.msrb.gmra.mxu0 %v100_v61  ;;  %671 = vmatpush.bf16.msrb.mxu3 %v1100_v8 }
  0x54   :  { %576 = vmatmul.bf16.vlgmr.msrb.gmra.mxu1 %v101_v62 }
  0x56   :  { %754 = vmatpush.bf16.msra.mxu2 %v1108_v38 }
  0xb0   :  { %v512_v6 = vpop.f32.mrf.mxu0 }
  0xb1   :  { %v525_v7 = vpop.f32.mrf.mxu1  ;;  %v513_v17 = vadd.f32 %v1123_v15, %v512_v6 }
  0xb3   :  { %v526_v21 = vadd.f32 %v525_v7, %v513_v17 }
  0xb8   :  { %v514_v9 = vpop.f32.mrf.mxu0  ;;  %v538_v12 = vpop.f32.mrf.mxu2 }
  0xb9   :  { %v527_v10 = vpop.f32.mrf.mxu1  ;;  %v551_v13 = vpop.f32.mrf.mxu3  ;;  %v539_v23 = vadd.f32 %v538_v12, %v526_v21 }
  0xbb   :  { %v552_v26 = vadd.f32 %v551_v13, %v539_v23 }
  0xc0   :  { %v540_v18 = vpop.f32.mrf.mxu2 }
  0xc1   :  { %v553_v19 = vpop.f32.mrf.mxu3 }
  0xc8   :  { %v590_v24 = vpop.f32.mrf.mxu2 }
  0xd0   :  { %v564_v27 = vpop.f32.mrf.mxu0  ;;  %v592_v31 = vpop.f32.mrf.mxu2 }
  0xd1   :  { %v577_v28 = vpop.f32.mrf.mxu1  ;;  %v565_v29 = vadd.f32 %v564_v27, %v552_v26 }
  0xd3   :  { %v578_v30 = vadd.f32 %v577_v28, %v565_v29 }
  0xd5   :  { %v591_v32 = vadd.f32 %v590_v24, %v578_v30 }
  0xd7   :  { %v594_v33 = vmax.f32 %v591_v32, 0.0 }
  0xd8   :  { %v566_v34 = vpop.f32.mrf.mxu0 }
  0xd9   :  { %v579_v35 = vpop.f32.mrf.mxu1  ;;  %v595_v36 = vpack.c.bf16 %v594_v33, %v594_v33 }
  0xdb   :  { %672 = vmatmul.bf16.vlgmr.msrb.gmra.mxu3 %v595_v36 }
 0x15e   :  { %v673_v40 = vpop.f32.mrf.mxu3 }
 0x15f   :  { %v674_v41 = vadd.f32 %v1124_v39, %v673_v40 }
 0x161   :  { %v677_v42 = vmax.f32 %v674_v41, 0.0 }
 0x163   :  { %v678_v43 = vpack.c.bf16 %v677_v42, %v677_v42 }
 0x165   :  { %755 = vmatmul.bf16.vlgmr.msra.gmra.mxu2 %v678_v43 }
 0x166   :  { %v675_v44 = vpop.f32.mrf.mxu3 }
 0x1e8   :  { %v756_v46 = vpop.f32.mrf.mxu2 }
 0x1e9   :  { %v757_v47 = vadd.f32 %v1125_v45, %v756_v46 }
 0x1eb   :  { %760 = vmax.xlane.f32.xlu0 %v757_v47 }
 0x1f0   :  { %v758_v48 = vpop.f32.mrf.mxu2 }
 0x25e   :  { %v761_v49 = vpop.xlane.xlu0 %760 }
 0x25f   :  { %v762_v50 = vsub.f32 %v757_v47, %v761_v49 }
 0x261   :  { %v763_v51 = vmul.f32 1.442695, %v762_v50 }
 0x263   :  { %1126 = vpow2.f32 %v763_v51 }
 0x269   :  { %v1127_v52 = vpop.eup %1126 }
 0x26a   :  { %765 = vadd.xlane.f32.xlu0 %v1127_v52 }
 0x2dd   :  { %v766_v53 = vpop.xlane.xlu0 %765 }
 0x2de   :  { %1128 = vlog2.f32 %v766_v53 }
 0x2e4   :  { %v1129_v54 = vpop.eup %1128 }
 0x2e5   :  { %v768_v55 = vmul.f32 0.6931472, %v1129_v54 }
 0x2e7   :  { %v769_v56 = vsub.f32 %v762_v50, %v768_v55 }
 0x2e9   :  { %770 = vst [vmem:[#allocation10] sm:$0xff] %v769_v56 }
 0x2ea   :  { %781 = dma.vmem_to_hbm [thread:$0]  %s777_s24, 128, %s779_s27, [#allocation4]  }
 0x2eb   :  { %1256 = dma.done.wait [#allocation4], 128  }
 0x2ec   :  { %1257 = vsyncadd [#allocation4], 4294967168 }
 0x2ed   :  { %786 = vsyncpa [#allocation3], 1 }
 0x2ee   :  { %787 = vsyncpa [#allocation6], 1 }
 0x2ef   :  { %788 = vsyncpa [#allocation9], 1 }
 0x2f0   :  { %789 = vsyncpa [#allocation4], 1 }

</bundles_post_ra>
